<compile_context>
chip_gen: v6e
topology: v6e:2x2x1
jax: 0.10.0
libtpu: 0.0.40
codegen_flags: <defaults>
</compile_context>

<pallas_src>
import functools

import jax
import jax.numpy as jnp
from jax.experimental import pallas as pl
from jax.experimental.pallas import tpu as pltpu


def _round_up(a: int, b: int) -> int:
    return ((a + b - 1) // b) * b


def fc_kernel(x_ref, w_ref, r_ref, b_ref, o_ref):
    """One (bm, bn) output tile, reduced over the K grid axis.

    x_ref: (bm, bk) f32 LHS tile (cast to w dtype in-kernel for the MXU)
    w_ref: (bk, bn) folded-weight tile (bf16 or f32, pre-padded/pre-cast)
    r_ref: (bm, bn) residual tile (f32)
    b_ref: (1, bn)  folded bias (Linear bias + BN affine), f32
    o_ref: (bm, bn) f32 output tile — used directly as the K accumulator.
    """
    k = pl.program_id(2)

    @pl.when(k == 0)
    def _init():
        o_ref[...] = jnp.zeros_like(o_ref)

    x = x_ref[...]
    if x.dtype != w_ref.dtype:            # static check; bf16 MXU fast path
        x = x.astype(w_ref.dtype)
    o_ref[...] += jnp.dot(x, w_ref[...], preferred_element_type=jnp.float32)

    @pl.when(k == pl.num_programs(2) - 1)
    def _finalize():
        y = o_ref[...] + b_ref[...]       # folded Linear bias + BN affine (f32)
        y = jnp.maximum(y, 0.0)           # ReLU
        r = r_ref[...]
        if r.dtype != jnp.float32:        # static check
            r = r.astype(jnp.float32)
        o_ref[...] = y + r                # residual add (residual=None -> x)


def fold_linear_bn(w, b, gamma, beta, running_mean, running_var, eps=1e-5, *,
                   matmul_dtype=jnp.bfloat16, bn=512, bk=1024):
    """Fold eval-mode BatchNorm1d into the Linear layer, then pad to tile
    multiples and cast to the MXU dtype ONCE (hoisted out of the call path).

    w: (out, in) PyTorch Linear weight; b: (out,) Linear bias.
    Returns:
      w_folded: (Cinp, Coutp) in matmul_dtype (padded with zeros)
      b_folded: (1, Coutp) f32 (padded with zeros)
    such that (x @ w.T + b) * scale + shift == x @ w_folded[:Cin,:Cout] + b_folded[0,:Cout]
    """
    assert bn % 128 == 0 and bk % 128 == 0
    out_c, in_c = w.shape
    scale = gamma / jnp.sqrt(running_var + eps)
    shift = beta - running_mean * scale
    w_f = (w.T * scale[None, :]).astype(jnp.float32)        # (in, out)
    b_f = (b * scale + shift).astype(jnp.float32)           # (out,)

    bk_pad = min(bk, _round_up(in_c, 128))
    bn_pad = min(bn, _round_up(out_c, 128))
    cin_p = _round_up(in_c, bk_pad)
    cout_p = _round_up(out_c, bn_pad)

    w_f = jnp.pad(w_f, ((0, cin_p - in_c), (0, cout_p - out_c))).astype(matmul_dtype)
    b_f = jnp.pad(b_f, (0, cout_p - out_c)).reshape(1, cout_p)   # bias stays f32
    return w_f, b_f


@functools.partial(jax.jit,
                   static_argnames=("out_features", "bm", "bn", "bk", "use_pallas"))
def fc_forward(x, w_folded, b_folded, residual=None, *, out_features,
               bm=512, bn=512, bk=1024, use_pallas=None):
    """FC forward: ReLU(BN(Linear(x))) + residual, with BN pre-folded into w/b.

    x: (N, Cin) f32.  w_folded/b_folded come from fold_linear_bn (pre-padded,
    pre-cast).  residual defaults to x (requires Cin == out_features).
    """
    N, Cin = x.shape
    Cinp, Coutp = w_folded.shape
    Cout = out_features
    assert Cin <= Cinp and Cout <= Coutp
    assert Cinp % 128 == 0 and Coutp % 128 == 0
    assert b_folded.shape == (1, Coutp)
    assert x.dtype == jnp.float32, "kernel accumulates in the f32 output block"
    assert bn % 128 == 0 and bk % 128 == 0 and bm % 8 == 0

    r = x if residual is None else residual
    assert r.shape == (N, Cout)

    # ---- static tile planning ----
    bk_eff = min(bk, Cinp)
    while Cinp % bk_eff:          # Cinp is a multiple of 128 -> terminates >= 128
        bk_eff -= 128
    bn_eff = min(bn, Coutp)
    while Coutp % bn_eff:
        bn_eff -= 128
    bm_eff = min(bm, _round_up(N, 8))
    Np = _round_up(N, bm_eff)

    natural_grid = (Np // bm_eff, Coutp // bn_eff, Cinp // bk_eff)

    # ---- tiny-problem fast path: fused XLA dot+bias+relu+add ----
    if use_pallas is None:
        use_pallas = natural_grid != (1, 1, 1)
    if not use_pallas:
        y = jnp.dot(x.astype(w_folded.dtype), w_folded[:Cin, :Cout],
                    preferred_element_type=jnp.float32)
        y = jnp.maximum(y + b_folded[0, :Cout], 0.0)
        return (y + r.astype(jnp.float32)).astype(x.dtype)

    # v7x megacore: make sure a "parallel" grid axis has >= 2 blocks when cheap.
    if Coutp // bn_eff == 1 and bn_eff % 256 == 0:
        bn_eff //= 2
    if Np // bm_eff == 1 and Coutp // bn_eff == 1 and bm_eff % 16 == 0:
        bm_eff //= 2

    grid = (Np // bm_eff, Coutp // bn_eff, Cinp // bk_eff)
    gi, gj, gk = grid

    # ---- pad activations only when needed (static branches) ----
    x_in = x if (N == Np and Cin == Cinp) else jnp.pad(x, ((0, Np - N), (0, Cinp - Cin)))
    r_in = r if (N == Np and Cout == Coutp) else jnp.pad(r, ((0, Np - N), (0, Coutp - Cout)))

    w_isz = jnp.dtype(w_folded.dtype).itemsize
    cost = pl.CostEstimate(
        flops=2 * Np * Cinp * Coutp,
        transcendentals=0,
        bytes_accessed=(gj * Np * Cinp * 4             # x re-streamed per j-tile
                        + gi * Cinp * Coutp * w_isz    # W re-streamed per i-tile
                        + Np * Coutp * 4               # residual
                        + Np * Coutp * 4),             # output
    )

    # Double-buffered VMEM footprint -> explicit, generation-safe limit
    # (<= 48 MiB so it stays inside v7x's 64 MiB physical VMEM).
    vmem_bytes = 2 * (bm_eff * bk_eff * 4 + bk_eff * bn_eff * w_isz
                      + 2 * bm_eff * bn_eff * 4 + bn_eff * 4)
    vmem_limit = min(max(2 * vmem_bytes, 32 * 1024 * 1024), 48 * 1024 * 1024)

    out_pad = pl.pallas_call(
        fc_kernel,
        out_shape=jax.ShapeDtypeStruct((Np, Coutp), jnp.float32),
        grid_spec=pltpu.PrefetchScalarGridSpec(
            num_scalar_prefetch=0,
            grid=grid,
            in_specs=[
                pl.BlockSpec((bm_eff, bk_eff), lambda i, j, k: (i, k)),   # x (LHS)
                pl.BlockSpec((bk_eff, bn_eff), lambda i, j, k: (k, j)),   # W'
                pl.BlockSpec((bm_eff, bn_eff), lambda i, j, k: (i, j)),   # residual
                pl.BlockSpec((1, bn_eff), lambda i, j, k: (0, j)),        # b'
            ],
            out_specs=pl.BlockSpec((bm_eff, bn_eff), lambda i, j, k: (i, j)),
        ),
        compiler_params=pltpu.CompilerParams(
            dimension_semantics=("parallel", "parallel", "arbitrary"),
            vmem_limit_bytes=vmem_limit,
        ),
        cost_estimate=cost,
    )(x_in, w_folded, r_in, b_folded)

    if N == Np and Cout == Coutp:
        return out_pad
    return out_pad[:N, :Cout]


def make_params(key, in_channels, out_channels):
    """Deterministic synthetic parameters matching FC.__init__ shapes."""
    k_w, k_b, k_g, k_be, k_m, k_v = jax.random.split(key, 6)
    w = jax.random.normal(k_w, (out_channels, in_channels), jnp.float32) * 0.05
    b = jax.random.normal(k_b, (out_channels,), jnp.float32) * 0.05
    gamma = 1.0 + 0.1 * jax.random.normal(k_g, (out_channels,), jnp.float32)
    beta = 0.1 * jax.random.normal(k_be, (out_channels,), jnp.float32)
    running_mean = 0.1 * jax.random.normal(k_m, (out_channels,), jnp.float32)
    running_var = jnp.abs(jax.random.normal(k_v, (out_channels,), jnp.float32)) + 0.5
    return w, b, gamma, beta, running_mean, running_var


def _reference(x, w, b, gamma, beta, rm, rv, eps=1e-5):
    """Plain-JAX f32 reference of the PyTorch eval-mode forward."""
    lin = x @ w.T + b[None, :]
    bn = (lin - rm[None, :]) / jnp.sqrt(rv[None, :] + eps)
    bn = bn * gamma[None, :] + beta[None, :]
    return jnp.maximum(bn, 0.0) + x


if __name__ == "__main__":
    key = jax.random.PRNGKey(0)
    k_x, k_p, k_x2, k_p2 = jax.random.split(key, 4)

    # ---- test 1: small shape, forced through the Pallas kernel ----
    N, C = 16, 64   # batch, in_channels == out_channels (default residual = x)
    x = jax.random.normal(k_x, (N, C), jnp.float32)
    w, b, gamma, beta, rm, rv = make_params(k_p, C, C)
    ref = _reference(x, w, b, gamma, beta, rm, rv)

    # (a) f32-weight path -> numerically exact vs. the unfolded reference.
    wf32, bf32 = fold_linear_bn(w, b, gamma, beta, rm, rv, matmul_dtype=jnp.float32)
    out = jax.block_until_ready(fc_forward(x, wf32, bf32, out_features=C, use_pallas=True))
    assert out.shape == (N, C)
    assert jnp.allclose(out, ref, atol=1e-4, rtol=1e-4)

    # (b) default bf16-weight path (MXU fast path on v5e/v6e/v7x), f32 accumulate.
    wbf, bbf = fold_linear_bn(w, b, gamma, beta, rm, rv)
    out_bf = jax.block_until_ready(fc_forward(x, wbf, bbf, out_features=C, use_pallas=True))
    assert jnp.allclose(out_bf, ref, atol=3e-2, rtol=3e-2)

    # (c) auto dispatch: this tiny shape collapses to a single tile, so the
    # fused-XLA fast path is used; it must agree with the Pallas result.
    out_auto = jax.block_until_ready(fc_forward(x, wbf, bbf, out_features=C))
    assert jnp.allclose(out_auto, out_bf, atol=3e-3, rtol=3e-3)

    # ---- test 2: multi-tile grid (K accumulation + both parallel axes) ----
    N2, C2 = 64, 256
    x2 = jax.random.normal(k_x2, (N2, C2), jnp.float32)
    w2, b2, g2, be2, rm2, rv2 = make_params(k_p2, C2, C2)
    ref2 = _reference(x2, w2, b2, g2, be2, rm2, rv2)
    wf2, bb2 = fold_linear_bn(w2, b2, g2, be2, rm2, rv2, matmul_dtype=jnp.float32)
    out2 = jax.block_until_ready(
        fc_forward(x2, wf2, bb2, out_features=C2, bm=32, bn=128, bk=128,
                   use_pallas=True))
    assert out2.shape == (N2, C2)
    assert jnp.allclose(out2, ref2, atol=1e-4, rtol=1e-4)

    # TODO(synk): BatchNorm1d training-mode (batch-statistics) path not
    # implemented; kernel covers the inference/eval forward only.  fp8 (v7x)
    # / int8 (v5e-v6e) weight quantization paths are left out as well.
    print("KERNEL_OK")
</pallas_src>

<mosaic_0001>
module attributes {stable_mosaic.version = 11 : i64} {
  func.func @fc_kernel(%arg0: i32, %arg1: i32, %arg2: i32, %arg3: memref<8x128xf32, #tpu.memory_space<vmem>>, %arg4: memref<128x128xf32, #tpu.memory_space<vmem>>, %arg5: memref<8x128xf32, #tpu.memory_space<vmem>>, %arg6: memref<1x128xf32, #tpu.memory_space<vmem>>, %arg7: memref<8x128xf32, #tpu.memory_space<vmem>>) attributes {dimension_semantics = [#tpu.dimension_semantics<parallel>, #tpu.dimension_semantics<parallel>, #tpu.dimension_semantics<arbitrary>], iteration_bounds = array<i64: 2, 1, 1>, scalar_prefetch = 0 : i64, scratch_operands = 0 : i64, tpu.core_type = #tpu.core_type<tc>, window_params = [{transform_indices = @transform_0, window_bounds = array<i64: 8, 128>}, {transform_indices = @transform_1, window_bounds = array<i64: 128, 128>}, {transform_indices = @transform_2, window_bounds = array<i64: 8, 128>}, {transform_indices = @transform_3, window_bounds = array<i64: 1, 128>}, {transform_indices = @transform_4, window_bounds = array<i64: 8, 128>}]} {
    %c0_i32 = arith.constant 0 : i32
    %0 = arith.cmpi eq, %arg2, %c0_i32 : i32
    %1 = arith.extui %0 : i1 to i32
    %c0_i32_0 = arith.constant 0 : i32
    %2 = arith.cmpi ne, %1, %c0_i32_0 : i32
    scf.if %2 {
      %cst_10 = arith.constant 0.000000e+00 : f32
      %12 = vector.broadcast %cst_10 : f32 to vector<8x128xf32>
      %c0_11 = arith.constant 0 : index
      %c0_12 = arith.constant 0 : index
      %13 = vector.load %arg7[%c0_11, %c0_12] : memref<8x128xf32, #tpu.memory_space<vmem>>, vector<8x128xf32>
      tpu.vector_store %arg7[%c0_11, %c0_12], %12 {strides = array<i32>} : memref<8x128xf32, #tpu.memory_space<vmem>>, vector<8x128xf32>,
    } else {
    }
    %c0 = arith.constant 0 : index
    %c0_1 = arith.constant 0 : index
    %3 = vector.load %arg3[%c0, %c0_1] : memref<8x128xf32, #tpu.memory_space<vmem>>, vector<8x128xf32>
    %c0_2 = arith.constant 0 : index
    %c0_3 = arith.constant 0 : index
    %4 = vector.load %arg7[%c0_2, %c0_3] : memref<8x128xf32, #tpu.memory_space<vmem>>, vector<8x128xf32>
    %c0_4 = arith.constant 0 : index
    %c0_5 = arith.constant 0 : index
    %5 = vector.load %arg4[%c0_4, %c0_5] : memref<128x128xf32, #tpu.memory_space<vmem>>, vector<128x128xf32>
    %cst = arith.constant dense<0.000000e+00> : vector<8x128xf32>
    %6 = tpu.matmul %3, %5, %cst {dimension_numbers = #tpu.dot_dimension_numbers<[1], [0], [0], [1], [0, 0, 1, 1], [], []>} : vector<8x128xf32>, vector<128x128xf32>, vector<8x128xf32> -> vector<8x128xf32>
    %7 = arith.addf %4, %6 : vector<8x128xf32>
    %c0_6 = arith.constant 0 : index
    %c0_7 = arith.constant 0 : index
    %8 = vector.load %arg7[%c0_6, %c0_7] : memref<8x128xf32, #tpu.memory_space<vmem>>, vector<8x128xf32>
    tpu.vector_store %arg7[%c0_6, %c0_7], %7 {strides = array<i32>} : memref<8x128xf32, #tpu.memory_space<vmem>>, vector<8x128xf32>,
    %c0_i32_8 = arith.constant 0 : i32
    %9 = arith.cmpi eq, %arg2, %c0_i32_8 : i32
    %10 = arith.extui %9 : i1 to i32
    %c0_i32_9 = arith.constant 0 : i32
    %11 = arith.cmpi ne, %10, %c0_i32_9 : i32
    scf.if %11 {
      %c0_10 = arith.constant 0 : index
      %c0_11 = arith.constant 0 : index
      %12 = vector.load %arg7[%c0_10, %c0_11] : memref<8x128xf32, #tpu.memory_space<vmem>>, vector<8x128xf32>
      %c0_12 = arith.constant 0 : index
      %c0_13 = arith.constant 0 : index
      %13 = vector.load %arg6[%c0_12, %c0_13] : memref<1x128xf32, #tpu.memory_space<vmem>>, vector<1x128xf32>
      %14 = vector.broadcast %13 : vector<1x128xf32> to vector<8x128xf32>
      %15 = arith.addf %12, %14 : vector<8x128xf32>
      %cst_14 = arith.constant 0.000000e+00 : f32
      %16 = vector.broadcast %cst_14 : f32 to vector<8x128xf32>
      %17 = arith.maximumf %15, %16 : vector<8x128xf32>
      %c0_15 = arith.constant 0 : index
      %c0_16 = arith.constant 0 : index
      %18 = vector.load %arg5[%c0_15, %c0_16] : memref<8x128xf32, #tpu.memory_space<vmem>>, vector<8x128xf32>
      %19 = arith.addf %17, %18 : vector<8x128xf32>
      %c0_17 = arith.constant 0 : index
      %c0_18 = arith.constant 0 : index
      %20 = vector.load %arg7[%c0_17, %c0_18] : memref<8x128xf32, #tpu.memory_space<vmem>>, vector<8x128xf32>
      tpu.vector_store %arg7[%c0_17, %c0_18], %19 {strides = array<i32>} : memref<8x128xf32, #tpu.memory_space<vmem>>, vector<8x128xf32>,
    } else {
    }
    return
  }
  func.func @transform_0(%arg0: i32, %arg1: i32, %arg2: i32) -> (i32, i32) {
    %c0_i32 = arith.constant 0 : i32
    return %arg0, %arg2 : i32, i32
  }
  func.func @transform_1(%arg0: i32, %arg1: i32, %arg2: i32) -> (i32, i32) {
    %c0_i32 = arith.constant 0 : i32
    return %arg2, %arg1 : i32, i32
  }
  func.func @transform_2(%arg0: i32, %arg1: i32, %arg2: i32) -> (i32, i32) {
    %c0_i32 = arith.constant 0 : i32
    return %arg0, %arg1 : i32, i32
  }
  func.func @transform_3(%arg0: i32, %arg1: i32, %arg2: i32) -> (i32, i32) {
    %c0_i32 = arith.constant 0 : i32
    %c0_i32_0 = arith.constant 0 : i32
    return %c0_i32, %arg1 : i32, i32
  }
  func.func @transform_4(%arg0: i32, %arg1: i32, %arg2: i32) -> (i32, i32) {
    %c0_i32 = arith.constant 0 : i32
    return %arg0, %arg1 : i32, i32
  }
}

</mosaic_0001>

<bundles_post_ra>
// kernel: fc_forward.1
= control target key start
LH: loop header
LB: loop body
LE: loop exit
PB: predicated region body
PF: predicated region fallthrough
CT: control target
= control target key end

     0   :  { %9 = vsyncpa [#allocation3], 0  ;;  %s940_s0 = inlined_call_operand.vmem [shape: f32[16,128], index: 0, kind: input, shape index: {}, may-alias: {0,2}]   ;;  %s941_s1 = inlined_call_operand.hbm [shape: f32[128,128], index: 1, kind: input, shape index: {}]   ;;  %s942_s2 = inlined_call_operand.vmem [shape: f32[16,128], index: 2, kind: input, shape index: {}, may-alias: {0,2}]   ;;  %s943_s3 = inlined_call_operand.vmem [shape: f32[1,128], index: 3, kind: input, shape index: {}]   ;;  %s944_s4 = inlined_call_operand.hbm [shape: f32[16,128], index: 4, kind: output, shape index: {}]  }
   0x1   :  { %10 = vsyncpa [#allocation4], 0 }
   0x2   :  { %12 = vsyncpa [#allocation4 + $0x1], 0  ;;  %s814_s15 = smov 0   ;;  %s816_s16 = smov 0  }
   0x3   :  { %s818_s17 = smov 0   ;;  %s820_s18 = smov 0  }
   0x4   :  { %s822_s19 = smov 0   ;;  %s824_s20 = smov 0  }
   0x5 LB: > { %s537_s21 = sadd.s32 4294967295, %s781_s20   ;;  %s538_s22 = sadd.s32 4294967294, %s781_s20   ;;  %s781_s20 = sphi %s824_s20, %s18_s20   ;;  %s777_s19 = sphi %s822_s19, %s953_s19   ;;  %s773_s18 = sphi %s820_s18, %s952_s18   ;;  %s769_s17 = sphi %s818_s17, %s951_s17   ;;  %s765_s16 = sphi %s816_s16, %s950_s16   ;;  %s761_s15 = sphi %s814_s15, %s949_s15  }
   0x6   : > { %s37_s23 = sadd.s32 1, %s777_s19  ;;  %s156_s24 = sadd.s32 1, %s769_s17 }
   0x7   : > { %p39_p0 = scmp.ge.s32.totalorder %s37_s23, 2  ;;  %p166_p1 = scmp.ne.s32.totalorder %s769_s17, %s765_s16 }
   0x8   : > { %p167_p2 = scmp.eq.s32.totalorder %s537_s21, 1  ;;  %p172_p3 = scmp.ne.s32.totalorder %s765_s16, %s761_s15 }
   0x9   : > { %s955_s23 = smov (%p39_p0, %s37_s23), 0  ;;  %p173_p5 = scmp.eq.s32.totalorder %s538_s22, 1 }
   0xa   : > { %p854_p4 = por %p167_p2, %p166_p1  ;;  %s151_s26 = ssub.s32 %s777_s19, %s955_s23 }
   0xb   : > { %p539_p6 = scmp.ge.s32.totalorder %s781_s20, 1  ;;  %p154_p7 = scmp.eq.s32.totalorder %s151_s26, 0 }
   0xc   : > { %p861_p8 = por %p173_p5, %p172_p3  ;;  %p180_p9 = scmp.lt.s32.totalorder %s781_s20, 3 }
   0xd   : > { %s867_s28 = scalar_select %p154_p7, %s769_s17, %s156_s24  }
   0xe   : > { %p869_p10 = pnand %p539_p6, %p180_p9  ;;  %p873_p11 = scmp.eq.s32.totalorder %s537_s21, 0 }
   0xf   : > { %s783_s5 = smov [#allocation2]  }
  0x10   : > { %p611_p12 = pneg %p869_p10  ;;  %s196_s6 = sshll.u32 %s783_s5, 4  ;;  %s197_s6 = int_to_ptr.vmem [resolvable:$true] %s196_s6 }
  0x11   : > { %s686_s7 = scalar_lea.vmem %s197_s6, 2048  ;;  %p694_p5 = scmp.lt.s32.totalorder %s197_s6, %s197_s6 }
  0x12   : > { %p612_p13 = pnand %p873_p11, %p611_p12  ;;  %p687_p1 = scmp.ne.s32.totalorder %s197_s6, %s686_s7 }
  0x13   : > { %p695_p6 = scmp.lt.s32.totalorder %s686_s7, %s686_s7 }
  0x14   : > { %p677_p0 = pneg %p612_p13 }
  0x15   : > { %p696_p7 = por %p695_p6, %p694_p5 }
  0x16   : > { %p689_p2 = pnand %p687_p1, %p677_p0 }
  0x18   : > { %p690_p3 = pneg %p689_p2 }
  0x1a   : > { %p697_p9 = pnand %p696_p7, %p690_p3 }
  0x1c   : > { %700 = shalt.err (!%p697_p9)
}
  0x1d   : > { %s784_s8 = smov 128   ;;  %s785_s9 = smov 8  }
  0x1e   : > { %614 = dma.hbm_to_vmem [thread:$0]  (!%p612_p13), %s941_s1, 2048, %s197_s6, [#allocation3], %s784_s8, %s784_s8, %s785_s9  }
  0x1f   : > { %238 = sbr.rel (%p869_p10) target bundleno = 282 (0x11a), region = 36 }
  0x24   : > { %752 = dma.done.wait (%p873_p11), [#allocation3], 2048  }
  0x25   : > { %754 = vsyncadd (%p873_p11), [#allocation3], 4294965248  ;;  %v786_v0 = vmov 0.0   ;;  %vm787_vm0 = vmmov 0   ;;  %v316_v1 = vld [vmem:[#allocation2 + $0x78] sm:$0xff]  ;;  %v315_v2 = vld [vmem:[#allocation2 + $0x70] sm:$0xff] }
  0x26   : > { %570 = vmatprep.subr.mxu0 %v786_v0  ;;  %602 = vmatprep.mubr.msk.f32.mxu0 %vm787_vm0, %v786_v0  ;;  %v314_v3 = vld [vmem:[#allocation2 + $0x68] sm:$0xff]  ;;  %v313_v4 = vld [vmem:[#allocation2 + $0x60] sm:$0xff]  ;;  %v312_v5 = vld [vmem:[#allocation2 + $0x58] sm:$0xff]  ;;  %p276_p10 = scmp.lt.s32.totalorder %s773_s18, 1  ;;  %s273_s24 = sand.u32 1, %s765_s16  }
  0x27   : > { %571 = vmatpush3.msra.mxu0 %v316_v1  ;;  %v311_v6 = vld [vmem:[#allocation2 + $0x50] sm:$0xff]  ;;  %v310_v7 = vld [vmem:[#allocation2 + $0x48] sm:$0xff]  ;;  %v309_v8 = vld [vmem:[#allocation2 + $0x40] sm:$0xff]  ;;  %s545_s26 = sshll.u32 %s273_s24, 3  ;;  %s550_s8 = sshll.u32 %s773_s18, 7 }
  0x28   : > { %572 = vmatprep.subr.mxu0 %v786_v0  ;;  %v308_v9 = vld [vmem:[#allocation2 + $0x38] sm:$0xff]  ;;  %v307_v10 = vld [vmem:[#allocation2 + $0x30] sm:$0xff]  ;;  %v306_v11 = vld [vmem:[#allocation2 + $0x28] sm:$0xff]  ;;  %s277_s12 = scalar_select %p276_p10, %s773_s18, 1 }
  0x29   : > { %573 = vmatpush3.msra.mxu0 %v315_v2  ;;  %v305_v12 = vld [vmem:[#allocation2 + $0x20] sm:$0xff]  ;;  %v304_v13 = vld [vmem:[#allocation2 + $0x18] sm:$0xff]  ;;  %v303_v14 = vld [vmem:[#allocation2 + $0x10] sm:$0xff]  ;;  %s275_s9 = scalar_lea.vmem [#allocation5], %s545_s26  ;;  %s418_s14 = scalar_lea.hbm %s944_s4, %s550_s8 }
  0x2a   : > { %574 = vmatprep.subr.mxu0 %v786_v0  ;;  %s546_s13 = sshll.u32 %s277_s12, 3  ;;  %v302_v15 = vld [vmem:[#allocation2 + $0x8] sm:$0xff]  ;;  %v301_v16 = vld [vmem:[#allocation2] sm:$0xff]  ;;  %s420_s10 = sshll.u32 %s275_s9, 4  ;;  %s421_s10 = int_to_ptr.vmem [resolvable:$true] %s420_s10 }
  0x2b   : > { %575 = vmatpush3.msra.mxu0 %v314_v3  ;;  %s282_s22 = scalar_lea.vmem %s940_s0, %s546_s13  ;;  %v548_v19 = vld [vmem:[%s943_s3] ss:$0 sm:$0xff]  ;;  %s290_s7 = scalar_lea.vmem %s942_s2, %s546_s13 }
  0x2c   : > { %576 = vmatprep.subr.mxu0 %v786_v0  ;;  %v299_v17 = vld [vmem:[%s282_s22] sm:$0xff]  ;;  %s406_s21 = scalar_lea.sflag [#allocation4], %s273_s24  ;;  %s701_s22 = scalar_lea.vmem %s421_s10, 128 }
  0x2d   : > { %577 = vmatpush3.msra.mxu0 %v313_v4  ;;  %v402_v22 = vld [vmem:[%s290_s7] sm:$0xff]  ;;  %p702_p11 = scmp.ne.s32.totalorder %s421_s10, %s701_s22  ;;  %s788_s13 = smov [#allocation5]  }
  0x2e   : > { %578 = vmatprep.subr.mxu0 %v786_v0  ;;  %s705_s29 = sshll.u32 %s788_s13, 4  ;;  %s706_s29 = int_to_ptr.vmem [resolvable:$false] %s705_s29 }
  0x2f   : > { %579 = vmatpush3.msra.mxu0 %v312_v5  ;;  %p703_p12 = pnand %p702_p11, %p854_p4  ;;  %s707_s18 = scalar_lea.vmem %s706_s29, 256 }
  0x30   : > { %580 = vmatprep.subr.mxu0 %v786_v0  ;;  %p708_p0 = scmp.lt.s32.totalorder %s421_s10, %s706_s29  ;;  %p709_p1 = scmp.lt.s32.totalorder %s707_s18, %s701_s22 }
  0x31   : > { %581 = vmatpush3.msra.mxu0 %v311_v6  ;;  %p704_p13 = pneg %p703_p12 }
  0x32   : > { %582 = vmatprep.subr.mxu0 %v786_v0  ;;  %p710_p2 = por %p709_p1, %p708_p0 }
  0x33   : > { %583 = vmatpush3.msra.mxu0 %v310_v7 }
  0x34   : > { %584 = vmatprep.subr.mxu0 %v786_v0  ;;  %p711_p3 = pnand %p710_p2, %p704_p13 }
  0x35   : > { %585 = vmatpush3.msra.mxu0 %v309_v8 }
  0x36   : > { %586 = vmatprep.subr.mxu0 %v786_v0 }
  0x37   : > { %587 = vmatpush3.msra.mxu0 %v308_v9 }
  0x38   : > { %588 = vmatprep.subr.mxu0 %v786_v0 }
  0x39   : > { %589 = vmatpush3.msra.mxu0 %v307_v10 }
  0x3a   : > { %590 = vmatprep.subr.mxu0 %v786_v0 }
  0x3b   : > { %591 = vmatpush3.msra.mxu0 %v306_v11 }
  0x3c   : > { %592 = vmatprep.subr.mxu0 %v786_v0 }
  0x3d   : > { %593 = vmatpush3.msra.mxu0 %v305_v12 }
  0x3e   : > { %594 = vmatprep.subr.mxu0 %v786_v0 }
  0x3f   : > { %595 = vmatpush3.msra.mxu0 %v304_v13 }
  0x40   : > { %596 = vmatprep.subr.mxu0 %v786_v0 }
  0x41   : > { %597 = vmatpush3.msra.mxu0 %v303_v14 }
  0x42   : > { %598 = vmatprep.subr.mxu0 %v786_v0 }
  0x43   : > { %599 = vmatpush3.msra.mxu0 %v302_v15 }
  0x44   : > { %600 = vmatprep.subr.mxu0 %v786_v0 }
  0x45   : > { %601 = vmatpush3.msra.mxu0 %v301_v16 }
  0x46   : > { %603 = vmatmul.mubr.f32.vlgmr.msra.gmra.mxu0 %v299_v17 }
 0x106   : > { %v383_v18 = vpop.f32.mrf.mxu0 }
 0x107   : > { %v400_v21 = vadd.f32 %v548_v19, %v383_v18 }
 0x108   : > { %v604_v20 = vpop.f32.mrf.mxu0 }
 0x109   : > { %v401_v23 = vmax.f32 %v400_v21, 0.0 }
 0x10b   : > { %v403_v24 = vadd.f32 %v402_v22, %v401_v23 }
 0x10d   : > { %404 = vst [vmem:[%s275_s9] sm:$0xff] %v403_v24 }
 0x10e   : > { %714 = shalt.err (!%p711_p3)
}
 0x10f   : > { %s715_s26 = scalar_lea.hbm %s418_s14, 128  ;;  %s719_s5 = scalar_lea.hbm %s944_s4, 256 }
 0x110   : > { %p716_p5 = scmp.ne.s32.totalorder %s418_s14, %s715_s26  ;;  %p720_p9 = scmp.lt.s32.totalorder %s418_s14, %s944_s4 }
 0x111   : > { %p721_p10 = scmp.lt.s32.totalorder %s719_s5, %s715_s26 }
 0x112   : > { %p717_p6 = pnand %p716_p5, %p854_p4 }
 0x113   : > { %p722_p11 = por %p721_p10, %p720_p9 }
 0x114   : > { %p718_p7 = pneg %p717_p6 }
 0x116   : > { %p723_p12 = pnand %p722_p11, %p718_p7 }
 0x118   : > { %726 = shalt.err (!%p723_p12)
}
 0x119   : > { %609 = dma.vmem_to_hbm [thread:$0]  (%p854_p4), %s421_s10, 128, %s418_s14, %s406_s21  }
 0x11a PF: > { %p621_p13 = scmp.ge.s32.totalorder %s781_s20, 2  ;;  %s432_s8 = sand.u32 1, %s761_s15  }
 0x11b   : > { %s433_s9 = scalar_lea.sflag [#allocation4], %s432_s8 }
 0x11c   : > { %p616_p0 = pnand %p621_p13, %p861_p8 }
 0x11e   : > { %p617_p1 = pneg %p616_p0 }
 0x120   : > { %756 = dma.done.wait (%p617_p1), %s433_s9, 128  }
 0x121   : > { %758 = vsyncadd (%p617_p1), %s433_s9, 4294967168  ;;  %s18_s20 = sadd.s32 1, %s781_s20   ;;  %s949_s15 = smov %s765_s16 }
 0x122   : > { %p15_p2 = scmp.ge.s32.totalorder %s18_s20, 4   ;;  %s950_s16 = smov %s769_s17 }
 0x123   : > { %s951_s17 = smov %s867_s28  ;;  %s952_s18 = smov %s777_s19 }
 0x124   : > { %s953_s19 = smov %s955_s23  ;;  %17 = sbr.rel (!%p15_p2) target bundleno = 5 (0x5), region = 91 }
 0x129   :  { %438 = vsyncpa [#allocation3], 1 }
 0x12a   :  { %440 = vsyncpa [#allocation3 + $0x1], 1 }
 0x12b   :  { %441 = vsyncpa [#allocation4], 1 }
 0x12c   :  { %443 = vsyncpa [#allocation4 + $0x1], 1 }

</bundles_post_ra>
